<compile_context>
chip_gen: v6e
topology: v6e:2x2x1
jax: 0.10.0
libtpu: 0.0.40
codegen_flags: <defaults>
</compile_context>

<pallas_src>
import jax
import jax.numpy as jnp
import numpy as np
from jax import lax
from jax.experimental import pallas as pl
from jax.experimental.pallas import tpu as pltpu

EPS = 1e-5

# Batch-lane tile cap: big enough to amortize per-grid-step overhead, small enough
# that intermediates fit comfortably in 32 MiB scoped VMEM on every generation.
TB_MAX = 32768
TB_MIN = 1024   # below this, one small tile beats any splitting


def _mlp_kernel(p_ref, x_ref, o_ref):
    # Packed-parameter layout (f32, (32, 128)):
    #   p[ 0:16,  0:4 ]  = W1^T                 (16, 4)
    #   p[ 0:16,  4:5 ]  = b1                   (16, 1)
    #   p[16:32,  0:16]  = W2'^T (BN1 folded)   (16, 16)
    #   p[16:32, 16:17]  = b2'   (BN1 folded)   (16, 1)
    #   p[ 0:1 , 64:80]  = W3'^T (BN2 folded)   (1, 16)
    #   p[ 0:1 , 80:81]  = b3'   (BN2 folded)   (1, 1)
    x = x_ref[...]                                           # (4, TB) feature-major

    # layer_1 on the MXU (K=4); VPU only does bias + ReLU.
    h = jnp.dot(p_ref[0:16, 0:4], x,
                preferred_element_type=jnp.float32,
                precision=lax.Precision.HIGHEST)             # (16, TB)
    h = jnp.maximum(h + p_ref[0:16, 4:5], 0.0)               # + b1, ReLU
    # (BatchNorm1 already folded into layer_2's weights/bias.)

    # layer_2 on the MXU.
    h = jnp.dot(p_ref[16:32, 0:16], h,
                preferred_element_type=jnp.float32,
                precision=lax.Precision.HIGHEST)             # (16, TB)
    h = jnp.maximum(h + p_ref[16:32, 16:17], 0.0)            # + b2', ReLU
    # (BatchNorm2 folded into layer_out; Dropout is identity in eval mode.)

    # layer_out on the MXU: (1,16)@(16,TB) keeps the VALU path to one bias add.
    out = jnp.dot(p_ref[0:1, 64:80], h,
                  preferred_element_type=jnp.float32,
                  precision=lax.Precision.HIGHEST)           # (1, TB)
    o_ref[...] = out + p_ref[0:1, 80:81]                     # lane-dense unmasked store


def fold_and_pack_params(p):
    """Fold eval-mode BatchNorms into the next Linear (exact in f32) and pack all
    parameters into a single (8,128)-aligned f32 slab -> one DMA per call."""
    f32 = lambda a: jnp.asarray(a, jnp.float32)
    w1, b1 = f32(p["w1"]), f32(p["b1"])                # (4,16), (1,16)
    w2, b2 = f32(p["w2"]), f32(p["b2"])                # (16,16), (1,16)
    w3, b3 = f32(p["w3"]), f32(p["b3"])                # (16,1), (1,1)

    s1 = f32(p["g1"]) / jnp.sqrt(f32(p["v1"]) + EPS)   # (1,16)
    t1 = f32(p["be1"]) - f32(p["m1"]) * s1
    w2f = w2 * s1.reshape(16, 1)                       # scale rows of W2
    b2f = b2 + t1 @ w2

    s2 = f32(p["g2"]) / jnp.sqrt(f32(p["v2"]) + EPS)
    t2 = f32(p["be2"]) - f32(p["m2"]) * s2
    w3f = w3 * s2.reshape(16, 1)                       # (16,1)
    b3f = b3 + t2 @ w3                                 # (1,1)

    P = jnp.zeros((32, 128), jnp.float32)
    P = P.at[0:16, 0:4].set(w1.T)
    P = P.at[0:16, 4:5].set(b1.T)
    P = P.at[16:32, 0:16].set(w2f.T)
    P = P.at[16:32, 16:17].set(b2f.T)
    P = P.at[0:1, 64:80].set(w3f.T)
    P = P.at[0:1, 80:81].set(b3f)
    return P


def _pick_tiling(batch):
    """Choose (tile, padded_batch) so tile % 128 == 0, tile <= TB_MAX, tile divides
    padded_batch, and there are >= 2 tiles once the batch is big enough (megacore)."""
    b = pl.cdiv(batch, 128) * 128                      # lane-align
    if b <= TB_MIN:
        return b, b
    n_tiles = max(2, pl.cdiv(b, TB_MAX))
    tb = pl.cdiv(pl.cdiv(b, n_tiles), 128) * 128       # <= TB_MAX by construction
    return tb, n_tiles * tb


@jax.jit
def binary_classification_forward(x, packed):
    B = x.shape[0]
    tb, b_pad = _pick_tiling(B)

    x_fm = jnp.asarray(x, jnp.float32).T               # (4, B) feature-major
    if b_pad != B:
        # tiny (< one tile) lane padding; fuses with the transpose under jit
        x_fm = jnp.pad(x_fm, ((0, 0), (0, b_pad - B)))

    out_fm = pl.pallas_call(
        _mlp_kernel,
        out_shape=jax.ShapeDtypeStruct((1, b_pad), jnp.float32),
        grid=(b_pad // tb,),
        in_specs=[
            pl.BlockSpec((32, 128), lambda i: (0, 0)),  # packed params: resident
            pl.BlockSpec((4, tb), lambda i: (0, i)),    # x batch-lane tile
        ],
        out_specs=pl.BlockSpec((1, tb), lambda i: (0, i)),
        compiler_params=pltpu.CompilerParams(
            dimension_semantics=("parallel",),          # shard tiles across v7x's 2 TCs
            vmem_limit_bytes=32 * 1024 * 1024,          # explicit (v5e default is 16 MiB)
        ),
    )(packed, x_fm)

    # (1,B) -> (B,1) is layout-identical; use reshape, not transpose.
    return out_fm[0, :B].reshape(B, 1)


def init_params(key):
    """Deterministic init mimicking PyTorch defaults (uniform +/- 1/sqrt(fan_in))."""
    def linear(key, fan_in, fan_out):
        kw, kb = jax.random.split(key)
        bound = 1.0 / np.sqrt(fan_in)
        w = jax.random.uniform(kw, (fan_in, fan_out), jnp.float32, -bound, bound)
        b = jax.random.uniform(kb, (1, fan_out), jnp.float32, -bound, bound)
        return w, b

    k1, k2, k3 = jax.random.split(key, 3)
    w1, b1 = linear(k1, 4, 16)
    w2, b2 = linear(k2, 16, 16)
    w3, b3 = linear(k3, 16, 1)

    ones16 = jnp.ones((1, 16), jnp.float32)
    zeros16 = jnp.zeros((1, 16), jnp.float32)
    return dict(
        w1=w1, b1=b1, g1=ones16, be1=zeros16, m1=zeros16, v1=ones16,
        w2=w2, b2=b2, g2=ones16, be2=zeros16, m2=zeros16, v2=ones16,
        w3=w3, b3=b3,
    )


def reference_forward(x, p):
    hp = lambda a, b: jnp.dot(a, b, precision=lax.Precision.HIGHEST)
    h = jnp.maximum(hp(x, p["w1"]) + p["b1"], 0.0)
    h = (h - p["m1"]) / jnp.sqrt(p["v1"] + EPS) * p["g1"] + p["be1"]
    h = jnp.maximum(hp(h, p["w2"]) + p["b2"], 0.0)
    h = (h - p["m2"]) / jnp.sqrt(p["v2"] + EPS) * p["g2"] + p["be2"]
    return hp(h, p["w3"]) + p["b3"]


if __name__ == "__main__":
    key = jax.random.PRNGKey(0)
    kx1, kx2, kp = jax.random.split(key, 3)

    params = init_params(kp)
    packed = fold_and_pack_params(params)

    # Small batch (single tile).
    x_small = jax.random.normal(kx1, (8, 4), jnp.float32)
    out_small = jax.block_until_ready(binary_classification_forward(x_small, packed))
    np.testing.assert_allclose(
        np.asarray(out_small), np.asarray(reference_forward(x_small, params)),
        rtol=1e-5, atol=1e-5)
    assert out_small.shape == (8, 1)

    # Larger batch: exercises the multi-tile grid / megacore path.
    x_big = jax.random.normal(kx2, (2048, 4), jnp.float32)
    out_big = jax.block_until_ready(binary_classification_forward(x_big, packed))
    np.testing.assert_allclose(
        np.asarray(out_big), np.asarray(reference_forward(x_big, params)),
        rtol=1e-5, atol=1e-5)
    assert out_big.shape == (2048, 1)

    print("KERNEL_OK")
</pallas_src>

<mosaic_0001>
module attributes {stable_mosaic.version = 11 : i64} {
  func.func @_mlp_kernel(%arg0: i32, %arg1: memref<32x128xf32, #tpu.memory_space<vmem>>, %arg2: memref<4x128xf32, #tpu.memory_space<vmem>>, %arg3: memref<1x128xf32, #tpu.memory_space<vmem>>) attributes {dimension_semantics = [#tpu.dimension_semantics<parallel>], iteration_bounds = array<i64: 1>, scalar_prefetch = 0 : i64, scratch_operands = 0 : i64, tpu.core_type = #tpu.core_type<tc>, window_params = [{pipeline_mode = #tpu.pipeline_mode<synchronous>, transform_indices = @transform_0, window_bounds = array<i64: 32, 128>}, {transform_indices = @transform_1, window_bounds = array<i64: 4, 128>}, {transform_indices = @transform_2, window_bounds = array<i64: 1, 128>}]} {
    %c0 = arith.constant 0 : index
    %c0_0 = arith.constant 0 : index
    %0 = vector.load %arg2[%c0, %c0_0] : memref<4x128xf32, #tpu.memory_space<vmem>>, vector<4x128xf32>
    %c0_1 = arith.constant 0 : index
    %c0_2 = arith.constant 0 : index
    %1 = vector.load %arg1[%c0_1, %c0_2] : memref<32x128xf32, #tpu.memory_space<vmem>>, vector<16x4xf32>
    %cst = arith.constant dense<0.000000e+00> : vector<16x128xf32>
    %2 = tpu.matmul %1, %0, %cst {dimension_numbers = #tpu.dot_dimension_numbers<[1], [0], [0], [1], [0, 0, 1, 1], [], []>, precision = #tpu.contract_precision<fp32>} : vector<16x4xf32>, vector<4x128xf32>, vector<16x128xf32> -> vector<16x128xf32>
    %c0_3 = arith.constant 0 : index
    %c4 = arith.constant 4 : index
    %3 = vector.load %arg1[%c0_3, %c4] : memref<32x128xf32, #tpu.memory_space<vmem>>, vector<16x1xf32>
    %4 = vector.broadcast %3 : vector<16x1xf32> to vector<16x128xf32>
    %5 = arith.addf %2, %4 : vector<16x128xf32>
    %cst_4 = arith.constant 0.000000e+00 : f32
    %6 = vector.broadcast %cst_4 : f32 to vector<16x128xf32>
    %7 = arith.maximumf %5, %6 : vector<16x128xf32>
    %c16 = arith.constant 16 : index
    %c0_5 = arith.constant 0 : index
    %8 = vector.load %arg1[%c16, %c0_5] : memref<32x128xf32, #tpu.memory_space<vmem>>, vector<16x16xf32>
    %cst_6 = arith.constant dense<0.000000e+00> : vector<16x128xf32>
    %9 = tpu.matmul %8, %7, %cst_6 {dimension_numbers = #tpu.dot_dimension_numbers<[1], [0], [0], [1], [0, 0, 1, 1], [], []>, precision = #tpu.contract_precision<fp32>} : vector<16x16xf32>, vector<16x128xf32>, vector<16x128xf32> -> vector<16x128xf32>
    %c16_7 = arith.constant 16 : index
    %c16_8 = arith.constant 16 : index
    %10 = vector.load %arg1[%c16_7, %c16_8] : memref<32x128xf32, #tpu.memory_space<vmem>>, vector<16x1xf32>
    %11 = vector.broadcast %10 : vector<16x1xf32> to vector<16x128xf32>
    %12 = arith.addf %9, %11 : vector<16x128xf32>
    %cst_9 = arith.constant 0.000000e+00 : f32
    %13 = vector.broadcast %cst_9 : f32 to vector<16x128xf32>
    %14 = arith.maximumf %12, %13 : vector<16x128xf32>
    %c0_10 = arith.constant 0 : index
    %c64 = arith.constant 64 : index
    %15 = vector.load %arg1[%c0_10, %c64] : memref<32x128xf32, #tpu.memory_space<vmem>>, vector<1x16xf32>
    %cst_11 = arith.constant dense<0.000000e+00> : vector<1x128xf32>
    %16 = tpu.matmul %15, %14, %cst_11 {dimension_numbers = #tpu.dot_dimension_numbers<[1], [0], [0], [1], [0, 0, 1, 1], [], []>, precision = #tpu.contract_precision<fp32>} : vector<1x16xf32>, vector<16x128xf32>, vector<1x128xf32> -> vector<1x128xf32>
    %c0_12 = arith.constant 0 : index
    %c80 = arith.constant 80 : index
    %17 = vector.load %arg1[%c0_12, %c80] : memref<32x128xf32, #tpu.memory_space<vmem>>, vector<1x1xf32>
    %18 = vector.broadcast %17 : vector<1x1xf32> to vector<1x128xf32>
    %19 = arith.addf %16, %18 : vector<1x128xf32>
    %c0_13 = arith.constant 0 : index
    %c0_14 = arith.constant 0 : index
    %20 = vector.load %arg3[%c0_13, %c0_14] : memref<1x128xf32, #tpu.memory_space<vmem>>, vector<1x128xf32>
    tpu.vector_store %arg3[%c0_13, %c0_14], %19 {strides = array<i32>} : memref<1x128xf32, #tpu.memory_space<vmem>>, vector<1x128xf32>,
    return
  }
  func.func @transform_0(%arg0: i32) -> (i32, i32) {
    %c0_i32 = arith.constant 0 : i32
    %c0_i32_0 = arith.constant 0 : i32
    %c0_i32_1 = arith.constant 0 : i32
    return %c0_i32, %c0_i32_0 : i32, i32
  }
  func.func @transform_1(%arg0: i32) -> (i32, i32) {
    %c0_i32 = arith.constant 0 : i32
    %c0_i32_0 = arith.constant 0 : i32
    return %c0_i32, %arg0 : i32, i32
  }
  func.func @transform_2(%arg0: i32) -> (i32, i32) {
    %c0_i32 = arith.constant 0 : i32
    %c0_i32_0 = arith.constant 0 : i32
    return %c0_i32, %arg0 : i32, i32
  }
}

</mosaic_0001>

<bundles_post_ra>
// kernel: binary_classification_forward.1
= control target key start
LH: loop header
LB: loop body
LE: loop exit
PB: predicated region body
PF: predicated region fallthrough
CT: control target
= control target key end

     0   :  { %7 = vsyncpa [#allocation3], 0  ;;  %s1743_s9 = smov [#allocation2]   ;;  %s1834_s0 = inlined_call_operand.hbm [shape: f32[32,128], index: 0, kind: input, shape index: {}]   ;;  %s1835_s1 = inlined_call_operand.vmem [shape: f32[4,128], index: 1, kind: input, shape index: {}]   ;;  %s1836_s2 = inlined_call_operand.vmem [shape: f32[1,128], index: 2, kind: output, shape index: {}]  }
   0x1   :  { %s13_s10 = sshll.u32 %s1743_s9, 4  ;;  %s14_s10 = int_to_ptr.vmem [resolvable:$true] %s13_s10 }
   0x2   :  { %s1729_s11 = scalar_lea.vmem %s14_s10, 512  ;;  %p1734_p1 = scmp.lt.s32.totalorder %s14_s10, %s14_s10 }
   0x3   :  { %p1730_p0 = scmp.ne.s32.totalorder %s14_s10, %s1729_s11  ;;  %p1735_p2 = scmp.lt.s32.totalorder %s1729_s11, %s1729_s11 }
   0x5   :  { %p1736_p3 = por %p1735_p2, %p1734_p1 }
   0x7   :  { %p1737_p4 = pnand %p1736_p3, %p1730_p0 }
   0x9   :  { %1740 = shalt.err (!%p1737_p4)
}
   0xa   :  { %s1744_s12 = smov 128   ;;  %s1745_s13 = smov 8  }
   0xb   :  { %19 = dma.hbm_to_vmem [thread:$0]  %s1834_s0, 512, %s14_s10, [#allocation3], %s1744_s12, %s1744_s12, %s1745_s13  }
   0xc   :  { %1741 = dma.done.wait [#allocation3], 512  }
   0xd   :  { %1742 = vsyncadd [#allocation3], 4294966784  ;;  %v1746_v0 = vmov 4   ;;  %vm43_vm0 = vcmask 1043456   ;;  %vm38_vm1 = vcmask 31744   ;;  %v26_v2 = vld [vmem:[#allocation2] sm:$0xff] }
   0xe   :  { %1717 = vset.pattern.permute.xlu0 %v1746_v0  ;;  %v25_v1 = vld [vmem:[%s1835_s1] sm:$0xf]  ;;  %v27_v3 = vld [vmem:[#allocation2 + $0x8] sm:$0xff]  ;;  %v39_v5 = vsel %vm38_vm1, %v26_v2, 0  ;;  %v538_v22 = vld [vmem:[#allocation2 + $0x10] sm:$0xff]  ;;  %vm550_vm2 = vcmask 130048  }
   0xf   :  { %v45_v4 = vsel %vm43_vm0, %v25_v1, 0  ;;  %v41_v6 = vsel %vm38_vm1, %v27_v3, 0  ;;  %35 = vperm.xlu0 %1717, %v27_v3   ;;  %v113_v8 = vand.u32 4294901760, %v39_v5  ;;  %v551_v23 = vsel %vm550_vm2, %v538_v22, 0  ;;  %v1784_v29 = vld [vmem:[#allocation2] sm:$0x1] }
  0x10   :  { %v78_v7 = vand.u32 4294901760, %v45_v4  ;;  %v123_v9 = vand.u32 4294901760, %v41_v6  ;;  %v1774_v24 = vand.u32 4294901760, %v551_v23  ;;  %v539_v30 = vld [vmem:[#allocation2 + $0x18] sm:$0xff]  ;;  %v1747_v31 = vmov 16   ;;  %s1748_s0 = smov 64  }
  0x11   :  { %v114_v10 = vsub.f32 %v39_v5, %v113_v8  ;;  %1601 = vmatprep.mubr.f32.mxu1 %v113_v8  ;;  %1718 = vset.pattern.permute.xlu1 %v1747_v31  ;;  %v553_v33 = vsel %vm550_vm2, %v539_v30, 0  ;;  %vm1750_vm3 = vmmov 0  }
  0x12   :  { %1594 = vmatprep.subr.mxu0 %v78_v7  ;;  %v165_v11 = vsub.f32 %v45_v4, %v78_v7  ;;  %v124_v12 = vsub.f32 %v41_v6, %v123_v9  ;;  %v1777_v25 = vsub.f32 %v551_v23, %v1774_v24  ;;  %547 = vperm.xlu1 %1718, %v539_v30   ;;  %v1788_v37 = vand.u32 4294901760, %v553_v33 }
  0x13   :  { %1595 = vmatpush3.msra.mxu0 %v78_v7  ;;  %30 = vperm.xlu0 %1717, %v26_v2   ;;  %v115_v13 = vand.u32 4294901760, %v114_v10 }
  0x14   :  { %v166_v14 = vand.u32 4294901760, %v165_v11  ;;  %v125_v15 = vand.u32 4294901760, %v124_v12  ;;  %1604 = vmatprep.subr.mxu0 %v165_v11  ;;  %v624_v26 = vand.u32 4294901760, %v1777_v25  ;;  %v633_v47 = vsub.f32 %v553_v33, %v1788_v37 }
  0x15   :  { %v116_v16 = vsub.f32 %v114_v10, %v115_v13 }
  0x16   :  { %v167_v17 = vsub.f32 %v165_v11, %v166_v14  ;;  %v126_v18 = vsub.f32 %v124_v12, %v125_v15  ;;  %v625_v27 = vsub.f32 %v1777_v25, %v624_v26  ;;  %542 = vperm.xlu1 %1718, %v538_v22   ;;  %v634_v56 = vand.u32 4294901760, %v633_v47 }
  0x17   :  { %v117_v19 = vand.u32 4294901760, %v116_v16  ;;  %1065 = vrot.lane.b32.xlu0 %v1784_v29, %s1748_s0 }
  0x18   :  { %v168_v20 = vand.u32 4294901760, %v167_v17  ;;  %v127_v21 = vand.u32 4294901760, %v126_v18  ;;  %v626_v28 = vand.u32 4294901760, %v625_v27  ;;  %v635_v63 = vsub.f32 %v633_v47, %v634_v56 }
  0x19   :  { %1596 = vmatprep.mubr.f32.mxu0 %v117_v19 }
  0x1a   :  { %1599 = vmatprep.subr.mxu1 %v168_v20  ;;  %1597 = vmatmul.mubr.f32.vlgmr.msra.gmra.mxu0 %v127_v21  ;;  %v636_v4 = vand.u32 4294901760, %v635_v63 }
  0x1b   :  { %1600 = vmatpush3.msra.mxu1 %v168_v20  ;;  %1605 = vmatpush3.msra.mxu0 %v165_v11 }
  0x1c   :  { %1602 = vmatmul.mubr.f32.vlgmr.msra.gmra.mxu1 %v123_v9  ;;  %1609 = vmatprep.subr.mxu1 %v78_v7 }
  0x1d   :  { %1606 = vmatprep.mubr.f32.mxu0 %v114_v10  ;;  %1610 = vmatpush3.msra.mxu1 %v78_v7 }
  0x1e   :  { %1611 = vmatprep.mubr.f32.mxu1 %v115_v13  ;;  %1607 = vmatmul.mubr.f32.vlgmr.msra.gmra.mxu0 %v124_v12  ;;  %v1749_v12 = vmov 0.0   ;;  %v1751_v13 = vmov 80  }
  0x1f   :  { %1614 = vmatprep.subr.mxu0 %v166_v14  ;;  %1619 = vmatprep.subr.mxu1 %v78_v7 }
  0x20   :  { %1612 = vmatmul.mubr.f32.vlgmr.msra.gmra.mxu1 %v125_v15  ;;  %1615 = vmatpush3.msra.mxu0 %v166_v14 }
  0x21   :  { %1616 = vmatprep.mubr.f32.mxu0 %v113_v8  ;;  %1620 = vmatpush3.msra.mxu1 %v78_v7 }
  0x22   :  { %1621 = vmatprep.mubr.f32.mxu1 %v113_v8  ;;  %1617 = vmatmul.mubr.f32.vlgmr.msra.gmra.mxu0 %v123_v9 }
  0x23   :  { %1628 = vmatprep.mubr.f32.mxu0 %v626_v28  ;;  %1719 = vset.pattern.permute.xlu1 %v1751_v13 }
  0x24   :  { %1622 = vmatmul.mubr.f32.vlgmr.msra.gmra.mxu1 %v123_v9  ;;  %1720 = vset.pattern.permute.xlu0 %v1751_v13 }
  0x25   :  { %1635 = vmatprep.mubr.f32.mxu1 %v1774_v24  ;;  %1062 = vperm.xlu1 %1719, %v1784_v29  }
  0x8a   :  { %v36_v32 = vpop.permute.xlu0 %35 }
  0x8d   :  { %v548_v14 = vpop.permute.xlu1 %547 }
  0x8e   :  { %v31_v38 = vpop.permute.xlu0 %30 }
  0x91   :  { %v543_v20 = vpop.permute.xlu1 %542 }
  0x92   :  { %v1066_v16 = vpop.permute.xlu0 %1065 }
  0x93   :  { %v1067_v18 = vsel %vm550_vm2, %v1066_v16, 0 }
  0x94   :  { %v1807_v22 = vand.u32 4294901760, %v1067_v18 }
  0x96   :  { %v1137_v29 = vsub.f32 %v1067_v18, %v1807_v22 }
  0xda   :  { %v1598_v34 = vpop.f32.mrf.mxu0 }
  0xdb   :  { %v130_v35 = vadd.f32 %v1598_v34, %v36_v32 }
  0xdc   :  { %v1603_v36 = vpop.f32.mrf.mxu1  ;;  %v119_v39 = vpop.f32.mrf.mxu0 }
  0xdd   :  { %v212_v40 = vadd.f32 %v1603_v36, %v130_v35  ;;  %v120_v41 = vadd.f32 %v119_v39, %v31_v38  ;;  %v1138_v35 = vand.u32 4294901760, %v1137_v29 }
  0xde   :  { %v205_v42 = vpop.f32.mrf.mxu1  ;;  %v1608_v43 = vpop.f32.mrf.mxu0 }
  0xdf   :  { %v206_v44 = vadd.f32 %v205_v42, %v120_v41  ;;  %v293_v45 = vadd.f32 %v1608_v43, %v212_v40  ;;  %v1139_v43 = vsub.f32 %v1137_v29, %v1138_v35 }
  0xe0   :  { %v1613_v46 = vpop.f32.mrf.mxu1  ;;  %v285_v48 = vpop.f32.mrf.mxu0 }
  0xe1   :  { %v375_v49 = vadd.f32 %v1613_v46, %v293_v45  ;;  %v286_v50 = vadd.f32 %v285_v48, %v206_v44 }
  0xe2   :  { %v366_v51 = vpop.f32.mrf.mxu1  ;;  %v1618_v52 = vpop.f32.mrf.mxu0 }
  0xe3   :  { %v367_v53 = vadd.f32 %v366_v51, %v286_v50  ;;  %v455_v54 = vadd.f32 %v1618_v52, %v375_v49  ;;  %v1140_v49 = vand.u32 4294901760, %v1139_v43 }
  0xe4   :  { %v1623_v55 = vpop.f32.mrf.mxu1  ;;  %v448_v57 = vpop.f32.mrf.mxu0 }
  0xe5   :  { %v533_v58 = vadd.f32 %v1623_v55, %v455_v54  ;;  %v449_v59 = vadd.f32 %v448_v57, %v367_v53 }
  0xe6   :  { %v526_v60 = vpop.f32.mrf.mxu1 }
  0xe7   :  { %v537_v61 = vmax.f32 %v533_v58, 0.0  ;;  %v527_v62 = vadd.f32 %v526_v60, %v449_v59 }
  0xe9   :  { %v584_v0 = vand.u32 4294901760, %v537_v61  ;;  %v536_v1 = vmax.f32 %v527_v62, 0.0 }
  0xeb   :  { %v672_v2 = vsub.f32 %v537_v61, %v584_v0  ;;  %v587_v3 = vand.u32 4294901760, %v536_v1  ;;  %1624 = vmatprep.subr.mxu0 %v584_v0  ;;  %v1063_v61 = vpop.permute.xlu1 %1062 }
  0xec   :  { %1625 = vmatpush3.msra.mxu0 %v584_v0 }
  0xed   :  { %v679_v5 = vsub.f32 %v536_v1, %v587_v3  ;;  %1626 = vmatprep.subr.mxu0 %v587_v3  ;;  %v673_v6 = vand.u32 4294901760, %v672_v2 }
  0xee   :  { %1627 = vmatpush3.msra.mxu0 %v587_v3 }
  0xef   :  { %1638 = vmatprep.subr.mxu0 %v672_v2  ;;  %1629 = vmatmul.mubr.f32.vlgmr.msra.gmra.mxu0 %v636_v4  ;;  %v674_v7 = vsub.f32 %v672_v2, %v673_v6  ;;  %v680_v8 = vand.u32 4294901760, %v679_v5 }
  0xf0   :  { %1639 = vmatpush3.msra.mxu0 %v672_v2  ;;  %1642 = vmatprep.mubr.f32.mxu0 %v1777_v25 }
  0xf1   :  { %1640 = vmatprep.subr.mxu0 %v679_v5  ;;  %v675_v9 = vand.u32 4294901760, %v674_v7  ;;  %v681_v10 = vsub.f32 %v679_v5, %v680_v8 }
  0xf2   :  { %1641 = vmatpush3.msra.mxu0 %v679_v5 }
  0xf3   :  { %1631 = vmatprep.subr.mxu1 %v675_v9  ;;  %1652 = vmatprep.subr.mxu0 %v673_v6  ;;  %v682_v11 = vand.u32 4294901760, %v681_v10 }
  0xf4   :  { %1632 = vmatpush3.msra.mxu1 %v675_v9  ;;  %1643 = vmatmul.mubr.f32.vlgmr.msra.gmra.mxu0 %v633_v47 }
  0xf5   :  { %1653 = vmatpush3.msra.mxu0 %v673_v6  ;;  %1633 = vmatprep.subr.mxu1 %v682_v11 }
  0xf6   :  { %1654 = vmatprep.subr.mxu0 %v680_v8  ;;  %1634 = vmatpush3.msra.mxu1 %v682_v11 }
  0xf7   :  { %1655 = vmatpush3.msra.mxu0 %v680_v8  ;;  %1636 = vmatmul.mubr.f32.vlgmr.msra.gmra.mxu1 %v1788_v37 }
  0xf8   :  { %1645 = vmatprep.subr.mxu1 %v584_v0  ;;  %1649 = vmatprep.mubr.f32.mxu1 %v624_v26 }
  0xf9   :  { %1646 = vmatpush3.msra.mxu1 %v584_v0  ;;  %1656 = vmatprep.mubr.f32.mxu0 %v1774_v24 }
  0xfa   :  { %1647 = vmatprep.subr.mxu1 %v587_v3  ;;  %1657 = vmatmul.mubr.f32.vlgmr.msra.gmra.mxu0 %v1788_v37 }
  0xfb   :  { %1648 = vmatpush3.msra.mxu1 %v587_v3  ;;  %1666 = vmatprep.subr.mxu0 %v1749_v12 }
  0xfc   :  { %1650 = vmatmul.mubr.f32.vlgmr.msra.gmra.mxu1 %v634_v56  ;;  %1659 = vmatprep.subr.mxu1 %v584_v0 }
  0xfd   :  { %1660 = vmatpush3.msra.mxu1 %v584_v0  ;;  %1663 = vmatprep.mubr.f32.mxu1 %v1774_v24 }
  0xfe   :  { %1661 = vmatprep.subr.mxu1 %v587_v3  ;;  %1670 = vmatprep.mubr.msk.f32.mxu0 %vm1750_vm3, %v1749_v12 }
  0xff   :  { %1662 = vmatpush3.msra.mxu1 %v587_v3 }
 0x100   :  { %1664 = vmatmul.mubr.f32.vlgmr.msra.gmra.mxu1 %v1788_v37  ;;  %1673 = vmatprep.subr.mxu1 %v1749_v12 }
 0x101   :  { %1677 = vmatprep.mubr.msk.f32.mxu1 %vm1750_vm3, %v1749_v12 }
 0x1af   :  { %v1630_v15 = vpop.f32.mrf.mxu0 }
 0x1b0   :  { %v639_v21 = vadd.f32 %v1630_v15, %v548_v14 }
 0x1b1   :  { %v628_v17 = vpop.f32.mrf.mxu0 }
 0x1b2   :  { %v629_v24 = vadd.f32 %v628_v17, %v543_v20 }
 0x1b4   :  { %v1644_v19 = vpop.f32.mrf.mxu0 }
 0x1b6   :  { %v801_v26 = vpop.f32.mrf.mxu0 }
 0x1b7   :  { %v1637_v23 = vpop.f32.mrf.mxu1 }
 0x1b8   :  { %v726_v25 = vadd.f32 %v1637_v23, %v639_v21 }
 0x1b9   :  { %v719_v27 = vpop.f32.mrf.mxu1 }
 0x1ba   :  { %v809_v28 = vadd.f32 %v1644_v19, %v726_v25  ;;  %v720_v30 = vadd.f32 %v719_v27, %v629_v24  ;;  %v1658_v33 = vpop.f32.mrf.mxu0 }
 0x1bc   :  { %v802_v31 = vadd.f32 %v801_v26, %v720_v30  ;;  %v1651_v32 = vpop.f32.mrf.mxu1  ;;  %v968_v39 = vpop.f32.mrf.mxu0 }
 0x1bd   :  { %v892_v34 = vadd.f32 %v1651_v32, %v809_v28 }
 0x1be   :  { %v883_v36 = vpop.f32.mrf.mxu1 }
 0x1bf   :  { %v975_v37 = vadd.f32 %v1658_v33, %v892_v34  ;;  %v884_v38 = vadd.f32 %v883_v36, %v802_v31 }
 0x1c0   :  { %v1665_v40 = vpop.f32.mrf.mxu1 }
 0x1c1   :  { %v969_v41 = vadd.f32 %v968_v39, %v884_v38  ;;  %v1054_v42 = vadd.f32 %v1665_v40, %v975_v37 }
 0x1c2   :  { %v1047_v44 = vpop.f32.mrf.mxu1 }
 0x1c3   :  { %v1058_v45 = vmax.f32 %v1054_v42, 0.0  ;;  %v1048_v46 = vadd.f32 %v1047_v44, %v969_v41 }
 0x1c5   :  { %v1098_v47 = vand.u32 4294901760, %v1058_v45  ;;  %v1057_v48 = vmax.f32 %v1048_v46, 0.0 }
 0x1c7   :  { %v1176_v50 = vsub.f32 %v1058_v45, %v1098_v47  ;;  %v1101_v51 = vand.u32 4294901760, %v1057_v48  ;;  %1667 = vmatpush3.msra.mxu0 %v1098_v47 }
 0x1c8   :  { %1668 = vmatprep.subr.mxu0 %v1749_v12 }
 0x1c9   :  { %v1177_v52 = vand.u32 4294901760, %v1176_v50  ;;  %v1183_v53 = vsub.f32 %v1057_v48, %v1101_v51  ;;  %1669 = vmatpush3.msra.mxu0 %v1101_v51 }
 0x1ca   :  { %1671 = vmatmul.mubr.f32.vlgmr.msra.gmra.mxu0 %v1140_v49  ;;  %1680 = vmatprep.subr.mxu0 %v1749_v12 }
 0x1cb   :  { %v1178_v54 = vsub.f32 %v1176_v50, %v1177_v52  ;;  %v1184_v55 = vand.u32 4294901760, %v1183_v53  ;;  %1681 = vmatpush3.msra.mxu0 %v1176_v50  ;;  %1684 = vmatprep.mubr.msk.f32.mxu0 %vm1750_vm3, %v1749_v12 }
 0x1cc   :  { %1682 = vmatprep.subr.mxu0 %v1749_v12 }
 0x1cd   :  { %v1185_v56 = vsub.f32 %v1183_v53, %v1184_v55  ;;  %1683 = vmatpush3.msra.mxu0 %v1183_v53  ;;  %v1179_v57 = vand.u32 4294901760, %v1178_v54 }
 0x1ce   :  { %1685 = vmatmul.mubr.f32.vlgmr.msra.gmra.mxu0 %v1137_v29  ;;  %1694 = vmatprep.subr.mxu0 %v1749_v12 }
 0x1cf   :  { %1674 = vmatpush3.msra.mxu1 %v1179_v57  ;;  %1695 = vmatpush3.msra.mxu0 %v1177_v52  ;;  %v1186_v58 = vand.u32 4294901760, %v1185_v56 }
 0x1d0   :  { %1675 = vmatprep.subr.mxu1 %v1749_v12  ;;  %1696 = vmatprep.subr.mxu0 %v1749_v12 }
 0x1d1   :  { %1676 = vmatpush3.msra.mxu1 %v1186_v58  ;;  %1697 = vmatpush3.msra.mxu0 %v1184_v55 }
 0x1d2   :  { %1698 = vmatprep.mubr.msk.f32.mxu0 %vm1750_vm3, %v1749_v12  ;;  %1678 = vmatmul.mubr.f32.vlgmr.msra.gmra.mxu1 %v1807_v22 }
 0x1d3   :  { %1687 = vmatprep.subr.mxu1 %v1749_v12  ;;  %1699 = vmatmul.mubr.f32.vlgmr.msra.gmra.mxu0 %v1807_v22 }
 0x1d4   :  { %1688 = vmatpush3.msra.mxu1 %v1098_v47  ;;  %1691 = vmatprep.mubr.msk.f32.mxu1 %vm1750_vm3, %v1749_v12 }
 0x1d5   :  { %1689 = vmatprep.subr.mxu1 %v1749_v12 }
 0x1d6   :  { %1690 = vmatpush3.msra.mxu1 %v1101_v51 }
 0x1d7   :  { %1692 = vmatmul.mubr.f32.vlgmr.msra.gmra.mxu1 %v1138_v35  ;;  %1701 = vmatprep.subr.mxu1 %v1749_v12 }
 0x1d8   :  { %1702 = vmatpush3.msra.mxu1 %v1098_v47  ;;  %1705 = vmatprep.mubr.msk.f32.mxu1 %vm1750_vm3, %v1749_v12 }
 0x1d9   :  { %1703 = vmatprep.subr.mxu1 %v1749_v12 }
 0x1da   :  { %1704 = vmatpush3.msra.mxu1 %v1101_v51 }
 0x1db   :  { %1706 = vmatmul.mubr.f32.vlgmr.msra.gmra.mxu1 %v1807_v22 }
 0x28a   :  { %v1142_v59 = vpop.f32.mrf.mxu0 }
 0x28b   :  { %v1143_v0 = vadd.f32 %v1142_v59, %v1063_v61 }
 0x28c   :  { %v1672_v60 = vpop.f32.mrf.mxu0 }
 0x28e   :  { %v1299_v62 = vpop.f32.mrf.mxu0 }
 0x290   :  { %v1686_v63 = vpop.f32.mrf.mxu0 }
 0x292   :  { %v1223_v1 = vpop.f32.mrf.mxu1 }
 0x293   :  { %v1224_v2 = vadd.f32 %v1223_v1, %v1143_v0  ;;  %v1451_v3 = vpop.f32.mrf.mxu0 }
 0x294   :  { %v1679_v4 = vpop.f32.mrf.mxu1 }
 0x295   :  { %v1700_v5 = vpop.f32.mrf.mxu0  ;;  %v1300_v6 = vadd.f32 %v1299_v62, %v1224_v2 }
 0x297   :  { %v1374_v7 = vpop.f32.mrf.mxu1 }
 0x298   :  { %v1375_v8 = vadd.f32 %v1374_v7, %v1300_v6 }
 0x299   :  { %v1693_v9 = vpop.f32.mrf.mxu1 }
 0x29a   :  { %v1452_v10 = vadd.f32 %v1451_v3, %v1375_v8 }
 0x29b   :  { %v1524_v11 = vpop.f32.mrf.mxu1 }
 0x29c   :  { %v1525_v12 = vadd.f32 %v1524_v11, %v1452_v10 }
 0x29d   :  { %v1707_v13 = vpop.f32.mrf.mxu1 }
 0x29e   :  { %1528 = vst [vmem:[%s1836_s2] sm:$0x1] %v1525_v12 }
 0x29f   :  { %1533 = vsyncpa [#allocation3], 1 }

</bundles_post_ra>
